<compile_context>
chip_gen: v7x
topology: tpu7x:2x2x1
jax: 0.10.0
libtpu: 0.0.40
codegen_flags: <defaults>
</compile_context>

<pallas_src>
import functools

import jax
import jax.numpy as jnp
from jax.experimental import pallas as pl
from jax.experimental.pallas import tpu as pltpu


def _round_up(x: int, m: int) -> int:
    return ((x + m - 1) // m) * m


def _ffn_kernel(x_ref, w1_ref, b1_ref, w2_ref, b2_ref, o_ref, *, approximate_gelu: bool):
    x = x_ref[...]                                                       # (TM, D) bf16
    # Linear 1 -> f32 accumulator on the MXU
    h = jnp.dot(x, w1_ref[...], preferred_element_type=jnp.float32)     # (TM, H) f32
    h = h + b1_ref[...]                                                  # (1, H) f32 broadcast
    if approximate_gelu:
        # tanh GELU (EUP transcendental, effectively free under MXU work)
        c = jnp.float32(0.7978845608028654)
        h = 0.5 * h * (1.0 + jnp.tanh(c * (h + jnp.float32(0.044715) * h * h * h)))
    else:
        # Exact GELU (PyTorch nn.GELU default: erf-based)
        h = 0.5 * h * (1.0 + jax.lax.erf(h * jnp.float32(0.7071067811865476)))
    h = h.astype(w2_ref.dtype)                                           # bf16 for 2nd MXU pass
    # Linear 2 -> f32 accumulator
    o = jnp.dot(h, w2_ref[...], preferred_element_type=jnp.float32)     # (TM, D) f32
    o = o + b2_ref[...]                                                  # (1, D) f32 broadcast
    o_ref[...] = o.astype(o_ref.dtype)


def feed_forward(x, w1, b1, w2, b2, *, tile_m: int = 512,
                 compute_dtype=jnp.bfloat16, approximate_gelu: bool = False):
    """x: (B, S, D); w1: (D, H); b1: (H,); w2: (H, D); b2: (D,).

    Weights are stored as (in_features, out_features) (transpose of nn.Linear.weight),
    so the kernel does plain x @ W + b. D and H should be multiples of 128 for
    lane-dense, unmasked stores and full MXU tiles.
    """
    B, S, D = x.shape
    H = w1.shape[1]
    M = B * S

    # Token tile: multiple of 8 sublanes, capped at tile_m, padded up to a whole grid.
    TM = min(tile_m, _round_up(M, 8))
    M_pad = _round_up(M, TM)
    num_tiles = M_pad // TM

    x2 = x.reshape(M, D)
    if M_pad != M:
        x2 = jnp.pad(x2, ((0, M_pad - M), (0, 0)))

    # bf16 matmul operands (MXU peak on v5e/v6e/v7x), f32 accumulation inside the kernel.
    x2 = x2.astype(compute_dtype)
    w1c = w1.astype(compute_dtype)
    w2c = w2.astype(compute_dtype)
    b1f = b1.reshape(1, H).astype(jnp.float32)
    b2f = b2.reshape(1, D).astype(jnp.float32)

    itemsize = jnp.dtype(compute_dtype).itemsize
    out_itemsize = jnp.dtype(x.dtype).itemsize
    vmem_needed = (
        D * H * itemsize * 2            # w1 + w2 resident
        + (H + D) * 4                   # biases
        + 2 * TM * D * itemsize         # double-buffered input tiles
        + 2 * TM * D * out_itemsize     # double-buffered output tiles
        + 2 * TM * H * 4                # f32 intermediate + headroom
    )
    # Explicit scoped-VMEM budget; capped at v7x's 64 MiB physical VMEM per TensorCore.
    vmem_limit = int(min(max(2 * vmem_needed, 32 << 20), 64 << 20))

    cost = pl.CostEstimate(
        flops=4 * M * D * H,            # two (M,D,H) matmuls
        transcendentals=M * H,          # one GELU transcendental per hidden activation
        bytes_accessed=(x2.size + w1c.size + w2c.size) * itemsize
        + (b1f.size + b2f.size) * 4
        + M_pad * D * out_itemsize,
    )

    out = pl.pallas_call(
        functools.partial(_ffn_kernel, approximate_gelu=approximate_gelu),
        out_shape=jax.ShapeDtypeStruct((M_pad, D), x.dtype),
        grid=(num_tiles,),
        in_specs=[
            pl.BlockSpec((TM, D), lambda i: (i, 0)),   # streamed token tile
            pl.BlockSpec((D, H), lambda i: (0, 0)),    # w1: resident across all tiles
            pl.BlockSpec((1, H), lambda i: (0, 0)),    # b1: resident
            pl.BlockSpec((H, D), lambda i: (0, 0)),    # w2: resident
            pl.BlockSpec((1, D), lambda i: (0, 0)),    # b2: resident
        ],
        out_specs=pl.BlockSpec((TM, D), lambda i: (i, 0)),
        compiler_params=pltpu.CompilerParams(
            dimension_semantics=("parallel",),          # shard row-tiles across TCs on v7x
            vmem_limit_bytes=vmem_limit,
        ),
        cost_estimate=cost,
    )(x2, w1c, b1f, w2c, b2f)

    return out[:M].reshape(B, S, D)


def init_params(key, dim, hidden_dim, dtype=jnp.float32):
    """PyTorch-style uniform(+/- 1/sqrt(fan_in)) init, weights as (in, out)."""
    k1, k2, k3, k4 = jax.random.split(key, 4)
    lim1 = 1.0 / jnp.sqrt(dim)
    lim2 = 1.0 / jnp.sqrt(hidden_dim)
    w1 = jax.random.uniform(k1, (dim, hidden_dim), dtype, -lim1, lim1)
    b1 = jax.random.uniform(k2, (hidden_dim,), dtype, -lim1, lim1)
    w2 = jax.random.uniform(k3, (hidden_dim, dim), dtype, -lim2, lim2)
    b2 = jax.random.uniform(k4, (dim,), dtype, -lim2, lim2)
    return w1, b1, w2, b2


if __name__ == "__main__":
    # Small but lane-aligned shapes (D, H multiples of 128).
    batch, seq, dim, hidden_dim = 2, 64, 128, 256
    key = jax.random.PRNGKey(0)
    kx, kp = jax.random.split(key)

    x = jax.random.normal(kx, (batch, seq, dim), dtype=jnp.float32)
    w1, b1, w2, b2 = init_params(kp, dim, hidden_dim)

    out = feed_forward(x, w1, b1, w2, b2)
    out = jax.block_until_ready(out)

    # Reference with identical numerics: bf16 matmul operands, f32 accumulation, erf GELU.
    xb = x.reshape(-1, dim).astype(jnp.bfloat16)
    h_ref = jnp.dot(xb, w1.astype(jnp.bfloat16),
                    preferred_element_type=jnp.float32) + b1.reshape(1, -1)
    h_ref = 0.5 * h_ref * (1.0 + jax.lax.erf(h_ref / jnp.sqrt(2.0)))
    h_ref = h_ref.astype(jnp.bfloat16)
    ref = jnp.dot(h_ref, w2.astype(jnp.bfloat16),
                  preferred_element_type=jnp.float32) + b2.reshape(1, -1)
    ref = ref.reshape(batch, seq, dim).astype(x.dtype)

    assert out.shape == (batch, seq, dim)
    assert jnp.allclose(out, ref, atol=1e-2, rtol=1e-2), "mismatch vs reference"

    print("KERNEL_OK")
</pallas_src>

<mosaic_0001>
module attributes {stable_mosaic.version = 11 : i64} {
  func.func @_ffn_kernel(%arg0: i32, %arg1: memref<128x128xbf16, #tpu.memory_space<vmem>>, %arg2: memref<128x256xbf16, #tpu.memory_space<vmem>>, %arg3: memref<1x256xf32, #tpu.memory_space<vmem>>, %arg4: memref<256x128xbf16, #tpu.memory_space<vmem>>, %arg5: memref<1x128xf32, #tpu.memory_space<vmem>>, %arg6: memref<128x128xf32, #tpu.memory_space<vmem>>) attributes {dimension_semantics = [#tpu.dimension_semantics<parallel>], iteration_bounds = array<i64: 1>, scalar_prefetch = 0 : i64, scratch_operands = 0 : i64, tpu.core_type = #tpu.core_type<tc>, window_params = [{transform_indices = @transform_0, window_bounds = array<i64: 128, 128>}, {pipeline_mode = #tpu.pipeline_mode<synchronous>, transform_indices = @transform_1, window_bounds = array<i64: 128, 256>}, {pipeline_mode = #tpu.pipeline_mode<synchronous>, transform_indices = @transform_2, window_bounds = array<i64: 1, 256>}, {pipeline_mode = #tpu.pipeline_mode<synchronous>, transform_indices = @transform_3, window_bounds = array<i64: 256, 128>}, {pipeline_mode = #tpu.pipeline_mode<synchronous>, transform_indices = @transform_4, window_bounds = array<i64: 1, 128>}, {transform_indices = @transform_5, window_bounds = array<i64: 128, 128>}]} {
    %c0 = arith.constant 0 : index
    %c0_0 = arith.constant 0 : index
    %0 = vector.load %arg1[%c0, %c0_0] : memref<128x128xbf16, #tpu.memory_space<vmem>>, vector<128x128xbf16>
    %c0_1 = arith.constant 0 : index
    %c0_2 = arith.constant 0 : index
    %1 = vector.load %arg2[%c0_1, %c0_2] : memref<128x256xbf16, #tpu.memory_space<vmem>>, vector<128x256xbf16>
    %cst = arith.constant dense<0.000000e+00> : vector<128x256xf32>
    %2 = tpu.matmul %0, %1, %cst {dimension_numbers = #tpu.dot_dimension_numbers<[1], [0], [0], [1], [0, 0, 1, 1], [], []>} : vector<128x128xbf16>, vector<128x256xbf16>, vector<128x256xf32> -> vector<128x256xf32>
    %c0_3 = arith.constant 0 : index
    %c0_4 = arith.constant 0 : index
    %3 = vector.load %arg3[%c0_3, %c0_4] : memref<1x256xf32, #tpu.memory_space<vmem>>, vector<1x256xf32>
    %4 = vector.broadcast %3 : vector<1x256xf32> to vector<128x256xf32>
    %5 = arith.addf %2, %4 : vector<128x256xf32>
    %cst_5 = arith.constant 5.000000e-01 : f32
    %6 = vector.broadcast %cst_5 : f32 to vector<128x256xf32>
    %7 = arith.mulf %6, %5 : vector<128x256xf32>
    %cst_6 = arith.constant 0.707106769 : f32
    %8 = vector.broadcast %cst_6 : f32 to vector<128x256xf32>
    %9 = arith.mulf %5, %8 : vector<128x256xf32>
    %10 = math.erf %9 : vector<128x256xf32>
    %cst_7 = arith.constant 1.000000e+00 : f32
    %11 = vector.broadcast %cst_7 : f32 to vector<128x256xf32>
    %12 = arith.addf %11, %10 : vector<128x256xf32>
    %13 = arith.mulf %7, %12 : vector<128x256xf32>
    %14 = arith.truncf %13 : vector<128x256xf32> to vector<128x256xbf16>
    %c0_8 = arith.constant 0 : index
    %c0_9 = arith.constant 0 : index
    %15 = vector.load %arg4[%c0_8, %c0_9] : memref<256x128xbf16, #tpu.memory_space<vmem>>, vector<256x128xbf16>
    %cst_10 = arith.constant dense<0.000000e+00> : vector<128x128xf32>
    %16 = tpu.matmul %14, %15, %cst_10 {dimension_numbers = #tpu.dot_dimension_numbers<[1], [0], [0], [1], [0, 0, 1, 1], [], []>} : vector<128x256xbf16>, vector<256x128xbf16>, vector<128x128xf32> -> vector<128x128xf32>
    %c0_11 = arith.constant 0 : index
    %c0_12 = arith.constant 0 : index
    %17 = vector.load %arg5[%c0_11, %c0_12] : memref<1x128xf32, #tpu.memory_space<vmem>>, vector<1x128xf32>
    %18 = vector.broadcast %17 : vector<1x128xf32> to vector<128x128xf32>
    %19 = arith.addf %16, %18 : vector<128x128xf32>
    %c0_13 = arith.constant 0 : index
    %c0_14 = arith.constant 0 : index
    %20 = vector.load %arg6[%c0_13, %c0_14] : memref<128x128xf32, #tpu.memory_space<vmem>>, vector<128x128xf32>
    tpu.vector_store %arg6[%c0_13, %c0_14], %19 {strides = array<i32>} : memref<128x128xf32, #tpu.memory_space<vmem>>, vector<128x128xf32>,
    return
  }
  func.func @transform_0(%arg0: i32) -> (i32, i32) {
    %c0_i32 = arith.constant 0 : i32
    %c0_i32_0 = arith.constant 0 : i32
    return %arg0, %c0_i32 : i32, i32
  }
  func.func @transform_1(%arg0: i32) -> (i32, i32) {
    %c0_i32 = arith.constant 0 : i32
    %c0_i32_0 = arith.constant 0 : i32
    %c0_i32_1 = arith.constant 0 : i32
    return %c0_i32, %c0_i32_0 : i32, i32
  }
  func.func @transform_2(%arg0: i32) -> (i32, i32) {
    %c0_i32 = arith.constant 0 : i32
    %c0_i32_0 = arith.constant 0 : i32
    %c0_i32_1 = arith.constant 0 : i32
    return %c0_i32, %c0_i32_0 : i32, i32
  }
  func.func @transform_3(%arg0: i32) -> (i32, i32) {
    %c0_i32 = arith.constant 0 : i32
    %c0_i32_0 = arith.constant 0 : i32
    %c0_i32_1 = arith.constant 0 : i32
    return %c0_i32, %c0_i32_0 : i32, i32
  }
  func.func @transform_4(%arg0: i32) -> (i32, i32) {
    %c0_i32 = arith.constant 0 : i32
    %c0_i32_0 = arith.constant 0 : i32
    %c0_i32_1 = arith.constant 0 : i32
    return %c0_i32, %c0_i32_0 : i32, i32
  }
  func.func @transform_5(%arg0: i32) -> (i32, i32) {
    %c0_i32 = arith.constant 0 : i32
    %c0_i32_0 = arith.constant 0 : i32
    return %arg0, %c0_i32 : i32, i32
  }
}

</mosaic_0001>

<bundles_post_ra>
// kernel: tpu_custom_call.1
= control target key start
LH: loop header
LB: loop body
LE: loop exit
PB: predicated region body
PF: predicated region fallthrough
CT: control target
= control target key end

     0   :  { %10 = vsyncpa [#allocation3], 0  ;;  %s1319_s0 = inlined_call_operand.hbm [shape: bf16[128,128], index: 0, kind: input, shape index: {}]   ;;  %s1320_s1 = inlined_call_operand.hbm [shape: bf16[128,256], index: 1, kind: input, shape index: {}]   ;;  %s1321_s2 = inlined_call_operand.vmem [shape: f32[1,256], index: 2, kind: input, shape index: {}]   ;;  %s1322_s3 = inlined_call_operand.hbm [shape: bf16[256,128], index: 3, kind: input, shape index: {}]   ;;  %s1323_s4 = inlined_call_operand.vmem [shape: f32[1,128], index: 4, kind: input, shape index: {}]   ;;  %s1324_s5 = inlined_call_operand.hbm [shape: f32[128,128], index: 5, kind: output, shape index: {}]  }
   0x1   :  { %11 = vsyncpa [#allocation6], 0 }
   0x2   :  { %12 = vsyncpa [#allocation4], 0  ;;  %s1110_s18 = smov [#allocation5]   ;;  %s1016_s22 = scalar_lea.hbm %s1320_s1, 2048 }
   0x3   :  { %s30_s19 = sshll.u32 %s1110_s18, 4  ;;  %p1017_p0 = scmp.ne.s32.totalorder %s1320_s1, %s1016_s22  ;;  %s31_s19 = int_to_ptr.vmem [resolvable:$true] %s30_s19 }
   0x4   :  { %p1020_p1 = scmp.lt.u32.totalorder %s1016_s22, %s1320_s1 }
   0x6   :  { %p1022_p2 = pnand %p1020_p1, %p1017_p0 }
   0x8   :  { %1025 = shalt.err (!%p1022_p2)
}
   0x9   :  { %s1026_s27 = scalar_lea.vmem %s31_s19, 2048  ;;  %p1031_p4 = scmp.lt.s32.totalorder %s31_s19, %s31_s19 }
   0xa   :  { %p1027_p3 = scmp.ne.s32.totalorder %s31_s19, %s1026_s27  ;;  %p1032_p5 = scmp.lt.s32.totalorder %s1026_s27, %s1026_s27 }
   0xc   :  { %p1033_p6 = por %p1032_p5, %p1031_p4 }
   0xe   :  { %p1034_p7 = pnand %p1033_p6, %p1027_p3 }
  0x10   :  { %1037 = shalt.err (!%p1034_p7)
}
  0x11   :  { %s1111_s28 = smov 128   ;;  %s1112_s29 = smov 8  }
  0x12   :  { %36 = dma.hbm_to_vmem [thread:$0]  %s1320_s1, 2048, %s31_s19, [#allocation6], %s1111_s28, %s1111_s28, %s1112_s29  }
  0x13   :  { %s1113_s7 = smov [#allocation2]   ;;  %s1038_s11 = scalar_lea.hbm %s1319_s0, 1024 }
  0x14   :  { %s18_s8 = sshll.u32 %s1113_s7, 4  ;;  %p1039_p8 = scmp.ne.s32.totalorder %s1319_s0, %s1038_s11  ;;  %s19_s8 = int_to_ptr.vmem [resolvable:$true] %s18_s8 }
  0x15   :  { %p1042_p9 = scmp.lt.u32.totalorder %s1038_s11, %s1319_s0 }
  0x17   :  { %p1044_p10 = pnand %p1042_p9, %p1039_p8 }
  0x19   :  { %1047 = shalt.err (!%p1044_p10)
}
  0x1a   :  { %s1048_s16 = scalar_lea.vmem %s19_s8, 1024  ;;  %p1053_p12 = scmp.lt.s32.totalorder %s19_s8, %s19_s8 }
  0x1b   :  { %p1049_p11 = scmp.ne.s32.totalorder %s19_s8, %s1048_s16  ;;  %p1054_p13 = scmp.lt.s32.totalorder %s1048_s16, %s1048_s16 }
  0x1d   :  { %p1055_p0 = por %p1054_p13, %p1053_p12 }
  0x1f   :  { %p1056_p1 = pnand %p1055_p0, %p1049_p11 }
  0x21   :  { %1059 = shalt.err (!%p1056_p1)
}
  0x22   :  { %s1114_s1 = smov 64   ;;  %s1115_s17 = smov 4  }
  0x23   :  { %24 = dma.hbm_to_vmem [thread:$0]  %s1319_s0, 1024, %s19_s8, [#allocation3], %s1114_s1, %s1114_s1, %s1115_s17  }
  0x24   :  { %s1116_s20 = smov [#allocation7]   ;;  %s1060_s24 = scalar_lea.hbm %s1322_s3, 2048 }
  0x25   :  { %s44_s21 = sshll.u32 %s1116_s20, 4  ;;  %p1061_p2 = scmp.ne.s32.totalorder %s1322_s3, %s1060_s24  ;;  %s45_s21 = int_to_ptr.vmem [resolvable:$true] %s44_s21 }
  0x26   :  { %p1064_p3 = scmp.lt.u32.totalorder %s1060_s24, %s1322_s3 }
  0x28   :  { %p1066_p4 = pnand %p1064_p3, %p1061_p2 }
  0x2a   :  { %1069 = shalt.err (!%p1066_p4)
}
  0x2b   :  { %s1070_s6 = scalar_lea.vmem %s45_s21, 2048  ;;  %p1075_p6 = scmp.lt.s32.totalorder %s45_s21, %s45_s21 }
  0x2c   :  { %p1071_p5 = scmp.ne.s32.totalorder %s45_s21, %s1070_s6  ;;  %p1076_p7 = scmp.lt.s32.totalorder %s1070_s6, %s1070_s6 }
  0x2e   :  { %p1077_p8 = por %p1076_p7, %p1075_p6 }
  0x30   :  { %p1078_p9 = pnand %p1077_p8, %p1071_p5 }
  0x32   :  { %1081 = shalt.err (!%p1078_p9)
}
  0x33   :  { %50 = dma.hbm_to_vmem [thread:$0]  %s1322_s3, 2048, %s45_s21, [#allocation6], %s1114_s1, %s1114_s1, %s1115_s17  }
  0x34   :  { %1104 = dma.done.wait [#allocation3], 1024  }
  0x35   :  { %1105 = vsyncadd [#allocation3], 4294966272 }
  0x36   :  { %1106 = dma.done.wait [#allocation6], 4096  }
  0x37   :  { %1107 = vsyncadd [#allocation6], 4294963200  ;;  %v1117_v0 = vmov 0   ;;  %v904_v1 = vld [vmem:[#allocation5 + $0x4] ss:$8 sps:$4 sm:$0xff]   ;;  %v930_v23 = vld [vmem:[#allocation2 + $0x10] sm:$0xff]   ;;  %v97_v41 = vlaneseq }
  0x38   :  { %267 = vmatprep.mubr.bf16.mxu0 %v1117_v0  ;;  %v906_v2 = vld [vmem:[#allocation5] ss:$8 sps:$4 sm:$0xff]   ;;  %235 = vmatprep.subr.bf16.mxu0 %v904_v1  ;;  %v907_v3 = vld [vmem:[#allocation5 + $0x14] ss:$8 sps:$4 sm:$0xff]   ;;  %v909_v4 = vld [vmem:[#allocation5 + $0x10] ss:$8 sps:$4 sm:$0xff]  }
  0x39   :  { %236 = vmatpush1.bf16.msra.mxu0 %v906_v2  ;;  %v910_v5 = vld [vmem:[#allocation5 + $0x24] ss:$8 sps:$4 sm:$0xff]   ;;  %v912_v6 = vld [vmem:[#allocation5 + $0x20] ss:$8 sps:$4 sm:$0xff]   ;;  %v913_v7 = vld [vmem:[#allocation5 + $0x34] ss:$8 sps:$4 sm:$0xff]  }
  0x3a   :  { %237 = vmatprep.subr.bf16.mxu0 %v907_v3  ;;  %v915_v8 = vld [vmem:[#allocation5 + $0x30] ss:$8 sps:$4 sm:$0xff]   ;;  %v916_v9 = vld [vmem:[#allocation5 + $0x44] ss:$8 sps:$4 sm:$0xff]   ;;  %v918_v10 = vld [vmem:[#allocation5 + $0x40] ss:$8 sps:$4 sm:$0xff]  }
  0x3b   :  { %v919_v11 = vld [vmem:[#allocation5 + $0x54] ss:$8 sps:$4 sm:$0xff]   ;;  %v921_v12 = vld [vmem:[#allocation5 + $0x50] ss:$8 sps:$4 sm:$0xff]   ;;  %v922_v13 = vld [vmem:[#allocation5 + $0x64] ss:$8 sps:$4 sm:$0xff]  }
  0x3c   :  { %v936_v14 = vld [vmem:[#allocation7 + $0x40] sm:$0xff]   ;;  %v938_v17 = vld [vmem:[#allocation7 + $0x48] sm:$0xff]   ;;  %v925_v18 = vld [vmem:[#allocation5 + $0x74] ss:$8 sps:$4 sm:$0xff]   ;;  %v98_v42 = vshrl.u32 %v97_v41, 7 }
  0x3d   :  { %238 = vmatpush1.bf16.msra.mxu0 %v909_v4  ;;  %v937_v15 = vld [vmem:[#allocation7] sm:$0xff]   ;;  %831 = vmatprep.subr.bf16.mxu1 %v936_v14  ;;  %v939_v19 = vld [vmem:[#allocation7 + $0x8] sm:$0xff]   ;;  %v927_v20 = vld [vmem:[#allocation5 + $0x70] ss:$8 sps:$4 sm:$0xff]  }
  0x3e   :  { %239 = vmatprep.subr.bf16.mxu0 %v910_v5  ;;  %v924_v16 = vld [vmem:[#allocation5 + $0x60] ss:$8 sps:$4 sm:$0xff]   ;;  %832 = vmatpush3.bf16.msra.mxu1 %v937_v15  ;;  %v931_v24 = vld [vmem:[#allocation2 + $0x18] sm:$0xff]   ;;  %v934_v27 = vld [vmem:[#allocation2 + $0x30] sm:$0xff]   ;;  %v99_v43 = vsub.s32 0, %v98_v42  ;;  %v103_v45 = vsub.s32 1, %v98_v42 }
  0x3f   :  { %833 = vmatprep.subr.bf16.mxu1 %v938_v17  ;;  %v928_v21 = vld [vmem:[#allocation2] sm:$0xff]   ;;  %v929_v22 = vld [vmem:[#allocation2 + $0x8] sm:$0xff]   ;;  %v935_v28 = vld [vmem:[#allocation2 + $0x38] sm:$0xff]  }
  0x40   :  { %v932_v25 = vld [vmem:[#allocation2 + $0x20] sm:$0xff]   ;;  %v933_v26 = vld [vmem:[#allocation2 + $0x28] sm:$0xff]   ;;  %v940_v29 = vld [vmem:[#allocation7 + $0x50] sm:$0xff]  }
  0x41   :  { %240 = vmatpush1.bf16.msra.mxu0 %v912_v6  ;;  %v941_v30 = vld [vmem:[#allocation7 + $0x10] sm:$0xff]   ;;  %v942_v31 = vld [vmem:[#allocation7 + $0x58] sm:$0xff]   ;;  %v944_v33 = vld [vmem:[#allocation7 + $0x60] sm:$0xff]  }
  0x42   :  { %241 = vmatprep.subr.bf16.mxu0 %v913_v7  ;;  %834 = vmatpush3.bf16.msra.mxu1 %v939_v19  ;;  %v943_v32 = vld [vmem:[#allocation7 + $0x18] sm:$0xff]   ;;  %v945_v34 = vld [vmem:[#allocation7 + $0x20] sm:$0xff]   ;;  %v946_v35 = vld [vmem:[#allocation7 + $0x68] sm:$0xff]  }
  0x43   :  { %835 = vmatprep.subr.bf16.mxu1 %v940_v29  ;;  %v947_v36 = vld [vmem:[#allocation7 + $0x28] sm:$0xff]   ;;  %v948_v37 = vld [vmem:[#allocation7 + $0x70] sm:$0xff]   ;;  %v950_v39 = vld [vmem:[#allocation7 + $0x78] sm:$0xff]  }
  0x44   :  { %v949_v38 = vld [vmem:[#allocation7 + $0x30] sm:$0xff]   ;;  %v951_v40 = vld [vmem:[#allocation7 + $0x38] sm:$0xff]   ;;  %v95_v44 = vld [vmem:[%s1321_s2] sm:$0x3] }
  0x45   :  { %242 = vmatpush1.bf16.msra.mxu0 %v915_v8  ;;  %v1191_v46 = vrot.slane %v95_v44, %v99_v43  ;;  %v1193_v47 = vrot.slane %v95_v44, %v103_v45 }
  0x46   :  { %243 = vmatprep.subr.bf16.mxu0 %v916_v9  ;;  %836 = vmatpush3.bf16.msra.mxu1 %v941_v30 }
  0x47   :  { %837 = vmatprep.subr.bf16.mxu1 %v942_v31 }
  0x49   :  { %244 = vmatpush1.bf16.msra.mxu0 %v918_v10 }
  0x4a   :  { %245 = vmatprep.subr.bf16.mxu0 %v919_v11  ;;  %838 = vmatpush3.bf16.msra.mxu1 %v943_v32 }
  0x4b   :  { %839 = vmatprep.subr.bf16.mxu1 %v944_v33 }
  0x4d   :  { %246 = vmatpush1.bf16.msra.mxu0 %v921_v12 }
  0x4e   :  { %247 = vmatprep.subr.bf16.mxu0 %v922_v13  ;;  %840 = vmatpush3.bf16.msra.mxu1 %v945_v34 }
  0x4f   :  { %841 = vmatprep.subr.bf16.mxu1 %v946_v35 }
  0x51   :  { %248 = vmatpush1.bf16.msra.mxu0 %v924_v16 }
  0x52   :  { %249 = vmatprep.subr.bf16.mxu0 %v925_v18  ;;  %842 = vmatpush3.bf16.msra.mxu1 %v947_v36 }
  0x53   :  { %843 = vmatprep.subr.bf16.mxu1 %v948_v37 }
  0x55   :  { %250 = vmatpush1.bf16.msra.mxu0 %v927_v20 }
  0x56   :  { %844 = vmatpush3.bf16.msra.mxu1 %v949_v38 }
  0x57   :  { %845 = vmatprep.subr.bf16.mxu1 %v950_v39 }
  0x58   :  { %268 = vmatmul.mubr.bf16.vlgmr.msra.gmra.mrb[0].mxu0 %v928_v21 }
  0x59   :  { %277 = vmatprep.mubr.bf16.mxu0 %v1117_v0 }
  0x5a   :  { %846 = vmatpush3.bf16.msra.mxu1 %v951_v40 }
  0x60   :  { %278 = vmatmul.mubr.bf16.gmra.mrb[4].mxu0 %v929_v22 }
  0x61   :  { %287 = vmatprep.mubr.bf16.mxu0 %v1117_v0 }
  0x68   :  { %288 = vmatmul.mubr.bf16.gmra.mrb[8].mxu0 %v930_v23 }
  0x69   :  { %297 = vmatprep.mubr.bf16.mxu0 %v1117_v0 }
  0x70   :  { %298 = vmatmul.mubr.bf16.gmra.mrb[12].mxu0 %v931_v24 }
  0x71   :  { %307 = vmatprep.mubr.bf16.mxu0 %v1117_v0 }
  0x78   :  { %308 = vmatmul.mubr.bf16.gmra.mrb[16].mxu0 %v932_v25 }
  0x79   :  { %317 = vmatprep.mubr.bf16.mxu0 %v1117_v0 }
  0x80   :  { %318 = vmatmul.mubr.bf16.gmra.mrb[20].mxu0 %v933_v26 }
  0x81   :  { %327 = vmatprep.mubr.bf16.mxu0 %v1117_v0 }
  0x88   :  { %328 = vmatmul.mubr.bf16.gmra.mrb[24].mxu0 %v934_v27 }
  0x89   :  { %337 = vmatprep.mubr.bf16.mxu0 %v1117_v0 }
  0x90   :  { %338 = vmatmul.mubr.bf16.gmra.mrb[28].mxu0 %v935_v28 }
 0x12b   :  { %v269_v48 = vpop.f32.mrb[0].mxu0 }
 0x12c   :  { %v270_v49 = vadd.f32 %v269_v48, %v1191_v46  ;;  %v271_v50 = vpop.f32.mrb[1].mxu0 }
 0x12d   :  { %v272_v51 = vadd.f32 %v271_v50, %v1193_v47  ;;  %v273_v52 = vpop.f32.mrb[2].mxu0 }
 0x12e   :  { %v380_v53 = vmul.f32 0.70710677, %v270_v49  ;;  %v274_v54 = vadd.f32 %v273_v52, %v1191_v46  ;;  %v275_v55 = vpop.f32.mrb[3].mxu0  ;;  %v348_v12 = vmul.f32 0.5, %v270_v49 }
 0x12f   :  { %v381_v56 = vmul.f32 0.70710677, %v272_v51  ;;  %v276_v57 = vadd.f32 %v275_v55, %v1193_v47  ;;  %v349_v22 = vmul.f32 0.5, %v272_v51 }
 0x130   :  { %952 = verf.f32 %v380_v53  ;;  %v382_v58 = vmul.f32 0.70710677, %v274_v54  ;;  %v350_v17 = vmul.f32 0.5, %v274_v54 }
 0x131   :  { %954 = verf.f32 %v381_v56  ;;  %v383_v59 = vmul.f32 0.70710677, %v276_v57  ;;  %v351_v28 = vmul.f32 0.5, %v276_v57 }
 0x132   :  { %956 = verf.f32 %v382_v58 }
 0x133   :  { %958 = verf.f32 %v383_v59  ;;  %v279_v60 = vpop.f32.mrb[4].mxu0 }
 0x134   :  { %v280_v61 = vadd.f32 %v279_v60, %v1191_v46  ;;  %v281_v62 = vpop.f32.mrb[5].mxu0 }
 0x135   :  { %v282_v63 = vadd.f32 %v281_v62, %v1193_v47  ;;  %v283_v0 = vpop.f32.mrb[6].mxu0 }
 0x136   :  { %v384_v1 = vmul.f32 0.70710677, %v280_v61  ;;  %v284_v2 = vadd.f32 %v283_v0, %v1191_v46  ;;  %v285_v3 = vpop.f32.mrb[7].mxu0  ;;  %v352_v49 = vmul.f32 0.5, %v280_v61 }
 0x137   :  { %v385_v4 = vmul.f32 0.70710677, %v282_v63  ;;  %v286_v5 = vadd.f32 %v285_v3, %v1193_v47  ;;  %v353_v54 = vmul.f32 0.5, %v282_v63 }
 0x138   :  { %960 = verf.f32 %v384_v1  ;;  %v386_v6 = vmul.f32 0.70710677, %v284_v2  ;;  %v354_v50 = vmul.f32 0.5, %v284_v2 }
 0x139   :  { %962 = verf.f32 %v385_v4  ;;  %v387_v7 = vmul.f32 0.70710677, %v286_v5  ;;  %v355_v55 = vmul.f32 0.5, %v286_v5 }
 0x13a   :  { %v953_v8 = vpop.eup %952  ;;  %964 = verf.f32 %v386_v6 }
 0x13b   :  { %v955_v9 = vpop.eup %954  ;;  %966 = verf.f32 %v387_v7  ;;  %v289_v10 = vpop.f32.mrb[8].mxu0  ;;  %v444_v13 = vadd.f32 1.0, %v953_v8 }
 0x13c   :  { %v957_v11 = vpop.eup %956  ;;  %v1204_v14 = vadd.f32 %v289_v10, %v1191_v46  ;;  %v291_v15 = vpop.f32.mrb[9].mxu0  ;;  %v445_v21 = vadd.f32 1.0, %v955_v9 }
 0x13d   :  { %v959_v16 = vpop.eup %958  ;;  %v446_v18 = vadd.f32 1.0, %v957_v11  ;;  %v1207_v19 = vadd.f32 %v291_v15, %v1193_v47  ;;  %v293_v20 = vpop.f32.mrb[10].mxu0  ;;  %v476_v31 = vmul.f32 %v444_v13, %v348_v12 }
 0x13e   :  { %v388_v23 = vmul.f32 0.70710677, %v1204_v14  ;;  %v1211_v24 = vadd.f32 %v293_v20, %v1191_v46  ;;  %v295_v25 = vpop.f32.mrb[11].mxu0  ;;  %v447_v26 = vadd.f32 1.0, %v959_v16  ;;  %v477_v34 = vmul.f32 %v445_v21, %v349_v22 }
 0x13f   :  { %v478_v27 = vmul.f32 %v446_v18, %v350_v17  ;;  %v389_v29 = vmul.f32 0.70710677, %v1207_v19  ;;  %v1215_v30 = vadd.f32 %v295_v25, %v1193_v47  ;;  %v356_v16 = vmul.f32 0.5, %v1204_v14 }
 0x140   :  { %968 = verf.f32 %v388_v23  ;;  %v390_v32 = vmul.f32 0.70710677, %v1211_v24  ;;  %v479_v35 = vmul.f32 %v447_v26, %v351_v28  ;;  %v358_v17 = vmul.f32 0.5, %v1211_v24 }
 0x141   :  { %970 = verf.f32 %v389_v29  ;;  %v391_v33 = vmul.f32 0.70710677, %v1215_v30  ;;  %v508_v37 = vpack.c.bf16 %v478_v27, %v476_v31  ;;  %v357_v22 = vmul.f32 0.5, %v1207_v19 }
 0x142   :  { %v961_v36 = vpop.eup %960  ;;  %972 = verf.f32 %v390_v32  ;;  %v509_v41 = vpack.c.bf16 %v479_v35, %v477_v34  ;;  %v359_v23 = vmul.f32 0.5, %v1215_v30 }
 0x143   :  { %v963_v38 = vpop.eup %962  ;;  %v448_v39 = vadd.f32 1.0, %v961_v36  ;;  %974 = verf.f32 %v391_v33  ;;  %v299_v40 = vpop.f32.mrb[12].mxu0 }
 0x144   :  { %v965_v42 = vpop.eup %964  ;;  %v449_v43 = vadd.f32 1.0, %v963_v38  ;;  %v1220_v44 = vadd.f32 %v299_v40, %v1191_v46  ;;  %v301_v45 = vpop.f32.mrb[13].mxu0  ;;  %691 = vmatprep.mubr.bf16.mxu1 %v509_v41 }
 0x145   :  { %v967_v48 = vpop.eup %966  ;;  %v450_v51 = vadd.f32 1.0, %v965_v42  ;;  %v1223_v52 = vadd.f32 %v301_v45, %v1193_v47  ;;  %v303_v53 = vpop.f32.mrb[14].mxu0  ;;  %692 = vmatmul.mubr.bf16.vlgmr.msra.gmra.mrb[0].mxu1 %v508_v37  ;;  %v480_v59 = vmul.f32 %v448_v39, %v352_v49 }
 0x146   :  { %v451_v56 = vadd.f32 1.0, %v967_v48  ;;  %v392_v57 = vmul.f32 0.70710677, %v1220_v44  ;;  %v305_v58 = vpop.f32.mrb[15].mxu0  ;;  %v304_v61 = vadd.f32 %v303_v53, %v1191_v46  ;;  %v481_v0 = vmul.f32 %v449_v43, %v353_v54 }
 0x147   :  { %v482_v60 = vmul.f32 %v450_v51, %v354_v50  ;;  %v393_v62 = vmul.f32 0.70710677, %v1223_v52  ;;  %v306_v2 = vadd.f32 %v305_v58, %v1193_v47  ;;  %v360_v43 = vmul.f32 0.5, %v1220_v44 }
 0x148   :  { %v483_v1 = vmul.f32 %v451_v56, %v355_v55  ;;  %976 = verf.f32 %v392_v57  ;;  %v394_v3 = vmul.f32 0.70710677, %v304_v61  ;;  %v361_v51 = vmul.f32 0.5, %v1223_v52 }
 0x149   :  { %978 = verf.f32 %v393_v62  ;;  %v510_v63 = vpack.c.bf16 %v482_v60, %v480_v59  ;;  %v395_v5 = vmul.f32 0.70710677, %v306_v2  ;;  %v362_v53 = vmul.f32 0.5, %v304_v61 }
 0x14a   :  { %v969_v4 = vpop.eup %968  ;;  %v511_v6 = vpack.c.bf16 %v483_v1, %v481_v0  ;;  %980 = verf.f32 %v394_v3  ;;  %v363_v57 = vmul.f32 0.5, %v306_v2 }
 0x14b   :  { %v971_v7 = vpop.eup %970  ;;  %v452_v8 = vadd.f32 1.0, %v969_v4  ;;  %v309_v9 = vpop.f32.mrb[16].mxu0  ;;  %982 = verf.f32 %v395_v5 }
 0x14c   :  { %v973_v10 = vpop.eup %972  ;;  %v453_v11 = vadd.f32 1.0, %v971_v7  ;;  %v1230_v12 = vadd.f32 %v309_v9, %v1191_v46  ;;  %v311_v13 = vpop.f32.mrb[17].mxu0  ;;  %699 = vmatprep.mubr.bf16.mxu1 %v511_v6 }
 0x14d   :  { %v975_v15 = vpop.eup %974  ;;  %v454_v18 = vadd.f32 1.0, %v973_v10  ;;  %v1235_v20 = vadd.f32 %v311_v13, %v1193_v47  ;;  %v313_v21 = vpop.f32.mrb[18].mxu0  ;;  %700 = vmatmul.mubr.bf16.gmra.mrb[4].mxu1 %v510_v63  ;;  %v484_v28 = vmul.f32 %v452_v8, %v356_v16 }
 0x14e   :  { %v455_v25 = vadd.f32 1.0, %v975_v15  ;;  %v396_v26 = vmul.f32 0.70710677, %v1230_v12  ;;  %v315_v27 = vpop.f32.mrb[19].mxu0  ;;  %v314_v24 = vadd.f32 %v313_v21, %v1191_v46  ;;  %v485_v31 = vmul.f32 %v453_v11, %v357_v22 }
 0x14f   :  { %v486_v29 = vmul.f32 %v454_v18, %v358_v17  ;;  %v397_v14 = vmul.f32 0.70710677, %v1235_v20  ;;  %v316_v33 = vadd.f32 %v315_v27, %v1193_v47  ;;  %v364_v11 = vmul.f32 0.5, %v1230_v12 }
 0x150   :  { %v487_v32 = vmul.f32 %v455_v25, %v359_v23  ;;  %984 = verf.f32 %v396_v26  ;;  %v398_v19 = vmul.f32 0.70710677, %v314_v24  ;;  %v365_v18 = vmul.f32 0.5, %v1235_v20 }
 0x151   :  { %986 = verf.f32 %v397_v14  ;;  %v512_v34 = vpack.c.bf16 %v486_v29, %v484_v28  ;;  %v399_v35 = vmul.f32 0.70710677, %v316_v33  ;;  %v366_v21 = vmul.f32 0.5, %v314_v24 }
 0x152   :  { %v977_v30 = vpop.eup %976  ;;  %v513_v36 = vpack.c.bf16 %v487_v32, %v485_v31  ;;  %988 = verf.f32 %v398_v19  ;;  %v367_v26 = vmul.f32 0.5, %v316_v33 }
 0x153   :  { %v979_v37 = vpop.eup %978  ;;  %v319_v38 = vpop.f32.mrb[20].mxu0  ;;  %v456_v39 = vadd.f32 1.0, %v977_v30  ;;  %990 = verf.f32 %v399_v35 }
 0x154   :  { %v1244_v40 = vadd.f32 %v319_v38, %v1191_v46  ;;  %v321_v41 = vpop.f32.mrb[21].mxu0  ;;  %707 = vmatprep.mubr.bf16.mxu1 %v513_v36  ;;  %v981_v42 = vpop.eup %980  ;;  %v457_v45 = vadd.f32 1.0, %v979_v37 }
 0x155   :  { %v1248_v48 = vadd.f32 %v321_v41, %v1193_v47  ;;  %v323_v49 = vpop.f32.mrb[22].mxu0  ;;  %v983_v50 = vpop.eup %982  ;;  %v458_v54 = vadd.f32 1.0, %v981_v42  ;;  %708 = vmatmul.mubr.bf16.gmra.mrb[8].mxu1 %v512_v34  ;;  %v488_v60 = vmul.f32 %v456_v39, %v360_v43 }
 0x156   :  { %v400_v55 = vmul.f32 0.70710677, %v1244_v40  ;;  %v325_v56 = vpop.f32.mrb[23].mxu0  ;;  %v459_v58 = vadd.f32 1.0, %v983_v50  ;;  %v1254_v44 = vadd.f32 %v323_v49, %v1191_v46  ;;  %v489_v52 = vmul.f32 %v457_v45, %v361_v51 }
 0x157   :  { %v401_v59 = vmul.f32 0.70710677, %v1248_v48  ;;  %v490_v62 = vmul.f32 %v458_v54, %v362_v53  ;;  %v1257_v0 = vadd.f32 %v325_v56, %v1193_v47  ;;  %v368_v42 = vmul.f32 0.5, %v1244_v40 }
 0x158   :  { %992 = verf.f32 %v400_v55  ;;  %v491_v61 = vmul.f32 %v459_v58, %v363_v57  ;;  %v402_v1 = vmul.f32 0.70710677, %v1254_v44  ;;  %v369_v51 = vmul.f32 0.5, %v1248_v48 }
 0x159   :  { %994 = verf.f32 %v401_v59  ;;  %v403_v2 = vmul.f32 0.70710677, %v1257_v0  ;;  %v514_v63 = vpack.c.bf16 %v490_v62, %v488_v60  ;;  %v370_v53 = vmul.f32 0.5, %v1254_v44 }
 0x15a   :  { %v985_v3 = vpop.eup %984  ;;  %996 = verf.f32 %v402_v1  ;;  %v515_v6 = vpack.c.bf16 %v491_v61, %v489_v52  ;;  %v371_v57 = vmul.f32 0.5, %v1257_v0 }
 0x15b   :  { %v987_v4 = vpop.eup %986  ;;  %v329_v5 = vpop.f32.mrb[24].mxu0  ;;  %v460_v7 = vadd.f32 1.0, %v985_v3  ;;  %998 = verf.f32 %v403_v2 }
 0x15c   :  { %v1262_v8 = vadd.f32 %v329_v5, %v1191_v46  ;;  %v331_v9 = vpop.f32.mrb[25].mxu0  ;;  %v989_v10 = vpop.eup %988  ;;  %v461_v13 = vadd.f32 1.0, %v987_v4  ;;  %715 = vmatprep.mubr.bf16.mxu1 %v515_v6 }
 0x15d   :  { %v1266_v15 = vadd.f32 %v331_v9, %v1193_v47  ;;  %v333_v16 = vpop.f32.mrb[26].mxu0  ;;  %v991_v17 = vpop.eup %990  ;;  %v462_v22 = vadd.f32 1.0, %v989_v10  ;;  %716 = vmatmul.mubr.bf16.gmra.mrb[12].mxu1 %v514_v63  ;;  %v492_v29 = vmul.f32 %v460_v7, %v364_v11 }
 0x15e   :  { %v404_v23 = vmul.f32 0.70710677, %v1262_v8  ;;  %v335_v25 = vpop.f32.mrb[27].mxu0  ;;  %v463_v27 = vadd.f32 1.0, %v991_v17  ;;  %v334_v12 = vadd.f32 %v333_v16, %v1191_v46  ;;  %v493_v32 = vmul.f32 %v461_v13, %v365_v18 }
 0x15f   :  { %v405_v28 = vmul.f32 0.70710677, %v1266_v15  ;;  %v494_v14 = vmul.f32 %v462_v22, %v366_v21  ;;  %v336_v31 = vadd.f32 %v335_v25, %v1193_v47  ;;  %v372_v7 = vmul.f32 0.5, %v1262_v8 }
 0x160   :  { %1000 = verf.f32 %v404_v23  ;;  %v495_v19 = vmul.f32 %v463_v27, %v367_v26  ;;  %v406_v20 = vmul.f32 0.70710677, %v334_v12  ;;  %v374_v9 = vmul.f32 0.5, %v334_v12 }
 0x161   :  { %1002 = verf.f32 %v405_v28  ;;  %v407_v34 = vmul.f32 0.70710677, %v336_v31  ;;  %v516_v30 = vpack.c.bf16 %v494_v14, %v492_v29  ;;  %v373_v10 = vmul.f32 0.5, %v1266_v15 }
 0x162   :  { %v993_v24 = vpop.eup %992  ;;  %1004 = verf.f32 %v406_v20  ;;  %v517_v36 = vpack.c.bf16 %v495_v19, %v493_v32  ;;  %v375_v11 = vmul.f32 0.5, %v336_v31 }
 0x163   :  { %v995_v35 = vpop.eup %994  ;;  %v339_v33 = vpop.f32.mrb[28].mxu0  ;;  %v464_v37 = vadd.f32 1.0, %v993_v24  ;;  %1006 = verf.f32 %v407_v34 }
 0x164   :  { %v340_v38 = vadd.f32 %v339_v33, %v1191_v46  ;;  %v341_v39 = vpop.f32.mrb[29].mxu0  ;;  %v997_v41 = vpop.eup %996  ;;  %v465_v43 = vadd.f32 1.0, %v995_v35  ;;  %723 = vmatprep.mubr.bf16.mxu1 %v517_v36 }
 0x165   :  { %v342_v45 = vadd.f32 %v341_v39, %v1193_v47  ;;  %v343_v49 = vpop.f32.mrb[30].mxu0  ;;  %v999_v50 = vpop.eup %998  ;;  %v466_v54 = vadd.f32 1.0, %v997_v41  ;;  %724 = vmatmul.mubr.bf16.gmra.mrb[16].mxu1 %v516_v30  ;;  %v496_v60 = vmul.f32 %v464_v37, %v368_v42  ;;  %v1286_v37 = vld [vmem:[%s1323_s4] ss:$0 sm:$0xff]  ;;  %s1118_s4 = smov [#allocation8]  }
 0x166   :  { %v408_v55 = vmul.f32 0.70710677, %v340_v38  ;;  %v345_v56 = vpop.f32.mrb[31].mxu0  ;;  %v467_v58 = vadd.f32 1.0, %v999_v50  ;;  %v344_v40 = vadd.f32 %v343_v49, %v1191_v46  ;;  %v497_v61 = vmul.f32 %v465_v43, %v369_v51  ;;  %s777_s10 = sshll.u32 %s1118_s4, 4  ;;  %s778_s10 = int_to_ptr.vmem [resolvable:$true] %s777_s10 }
 0x167   :  { %v409_v59 = vmul.f32 0.70710677, %v342_v45  ;;  %v498_v62 = vmul.f32 %v466_v54, %v370_v53  ;;  %v346_v52 = vadd.f32 %v345_v56, %v1193_v47  ;;  %v376_v12 = vmul.f32 0.5, %v340_v38  ;;  %s1082_s11 = scalar_lea.vmem %s778_s10, 2048  ;;  %p1087_p11 = scmp.lt.s32.totalorder %s778_s10, %s778_s10 }
 0x168   :  { %1008 = verf.f32 %v408_v55  ;;  %v499_v1 = vmul.f32 %v467_v58, %v371_v57  ;;  %v410_v48 = vmul.f32 0.70710677, %v344_v40  ;;  %v378_v14 = vmul.f32 0.5, %v344_v40  ;;  %p1083_p10 = scmp.ne.s32.totalorder %s778_s10, %s1082_s11  ;;  %p1088_p12 = scmp.lt.s32.totalorder %s1082_s11, %s1082_s11 }
 0x169   :  { %1010 = verf.f32 %v409_v59  ;;  %v411_v3 = vmul.f32 0.70710677, %v346_v52  ;;  %v518_v2 = vpack.c.bf16 %v498_v62, %v496_v60  ;;  %v377_v15 = vmul.f32 0.5, %v342_v45 }
 0x16a   :  { %v1001_v44 = vpop.eup %1000  ;;  %1012 = verf.f32 %v410_v48  ;;  %v519_v4 = vpack.c.bf16 %v499_v1, %v497_v61  ;;  %v379_v31 = vmul.f32 0.5, %v346_v52  ;;  %p1089_p13 = por %p1088_p12, %p1087_p11 }
 0x16b   :  { %v1003_v63 = vpop.eup %1002  ;;  %v468_v0 = vadd.f32 1.0, %v1001_v44  ;;  %1014 = verf.f32 %v411_v3 }
 0x16c   :  { %v1005_v5 = vpop.eup %1004  ;;  %v469_v6 = vadd.f32 1.0, %v1003_v63  ;;  %731 = vmatprep.mubr.bf16.mxu1 %v519_v4  ;;  %p1090_p0 = pnand %p1089_p13, %p1083_p10 }
 0x16d   :  { %v1007_v46 = vpop.eup %1006  ;;  %v470_v47 = vadd.f32 1.0, %v1005_v5  ;;  %732 = vmatmul.mubr.bf16.gmra.mrb[20].mxu1 %v518_v2  ;;  %v500_v16 = vmul.f32 %v468_v0, %v372_v7 }
 0x16e   :  { %v471_v13 = vadd.f32 1.0, %v1007_v46  ;;  %v501_v18 = vmul.f32 %v469_v6, %v373_v10 }
 0x16f   :  { %v502_v17 = vmul.f32 %v470_v47, %v374_v9 }
 0x170   :  { %v503_v21 = vmul.f32 %v471_v13, %v375_v11 }
 0x171   :  { %v520_v23 = vpack.c.bf16 %v502_v17, %v500_v16 }
 0x172   :  { %v1009_v22 = vpop.eup %1008  ;;  %v521_v26 = vpack.c.bf16 %v503_v21, %v501_v18 }
 0x173   :  { %v1011_v25 = vpop.eup %1010  ;;  %v472_v27 = vadd.f32 1.0, %v1009_v22 }
 0x174   :  { %v1013_v28 = vpop.eup %1012  ;;  %v473_v29 = vadd.f32 1.0, %v1011_v25  ;;  %739 = vmatprep.mubr.bf16.mxu1 %v521_v26 }
 0x175   :  { %v1015_v8 = vpop.eup %1014  ;;  %v474_v32 = vadd.f32 1.0, %v1013_v28  ;;  %740 = vmatmul.mubr.bf16.gmra.mrb[24].mxu1 %v520_v23  ;;  %v504_v20 = vmul.f32 %v472_v27, %v376_v12 }
 0x176   :  { %v475_v19 = vadd.f32 1.0, %v1015_v8  ;;  %v505_v34 = vmul.f32 %v473_v29, %v377_v15 }
 0x177   :  { %v506_v24 = vmul.f32 %v474_v32, %v378_v14 }
 0x178   :  { %v507_v30 = vmul.f32 %v475_v19, %v379_v31 }
 0x179   :  { %v522_v35 = vpack.c.bf16 %v506_v24, %v504_v20 }
 0x17a   :  { %v523_v33 = vpack.c.bf16 %v507_v30, %v505_v34 }
 0x17c   :  { %747 = vmatprep.mubr.bf16.mxu1 %v523_v33 }
 0x17d   :  { %748 = vmatmul.mubr.bf16.gmra.mrb[28].mxu1 %v522_v35 }
 0x218   :  { %v847_v36 = vpop.f32.mrb[0].mxu1 }
 0x219   :  { %v848_v38 = vpop.f32.mrb[1].mxu1 }
 0x21a   :  { %v849_v39 = vadd.f32 %v848_v38, %v847_v36  ;;  %v850_v41 = vpop.f32.mrb[2].mxu1 }
 0x21b   :  { %v851_v42 = vpop.f32.mrb[3].mxu1 }
 0x21c   :  { %v694_v43 = vadd.f32 %v849_v39, %v1286_v37  ;;  %v852_v45 = vadd.f32 %v851_v42, %v850_v41 }
 0x21e   :  { %756 = vst [vmem:[#allocation8] sm:$0xff] %v694_v43  ;;  %v697_v49 = vadd.f32 %v852_v45, %v1286_v37 }
 0x220   :  { %757 = vst [vmem:[#allocation8 + $0x8] sm:$0xff] %v697_v49  ;;  %v853_v50 = vpop.f32.mrb[4].mxu1 }
 0x221   :  { %v854_v51 = vpop.f32.mrb[5].mxu1 }
 0x222   :  { %v855_v53 = vadd.f32 %v854_v51, %v853_v50  ;;  %v856_v54 = vpop.f32.mrb[6].mxu1 }
 0x223   :  { %v857_v55 = vpop.f32.mrb[7].mxu1 }
 0x224   :  { %v702_v56 = vadd.f32 %v855_v53, %v1286_v37  ;;  %v858_v57 = vadd.f32 %v857_v55, %v856_v54 }
 0x226   :  { %758 = vst [vmem:[#allocation8 + $0x10] sm:$0xff] %v702_v56  ;;  %v705_v58 = vadd.f32 %v858_v57, %v1286_v37 }
 0x228   :  { %759 = vst [vmem:[#allocation8 + $0x18] sm:$0xff] %v705_v58  ;;  %v859_v59 = vpop.f32.mrb[8].mxu1 }
 0x229   :  { %v860_v40 = vpop.f32.mrb[9].mxu1 }
 0x22a   :  { %v861_v60 = vadd.f32 %v860_v40, %v859_v59  ;;  %v862_v62 = vpop.f32.mrb[10].mxu1 }
 0x22b   :  { %v863_v52 = vpop.f32.mrb[11].mxu1 }
 0x22c   :  { %v710_v61 = vadd.f32 %v861_v60, %v1286_v37  ;;  %v864_v1 = vadd.f32 %v863_v52, %v862_v62 }
 0x22e   :  { %760 = vst [vmem:[#allocation8 + $0x20] sm:$0xff] %v710_v61  ;;  %v713_v48 = vadd.f32 %v864_v1, %v1286_v37 }
 0x230   :  { %761 = vst [vmem:[#allocation8 + $0x28] sm:$0xff] %v713_v48  ;;  %v865_v44 = vpop.f32.mrb[12].mxu1 }
 0x231   :  { %v866_v3 = vpop.f32.mrb[13].mxu1 }
 0x232   :  { %v867_v2 = vadd.f32 %v866_v3, %v865_v44  ;;  %v868_v63 = vpop.f32.mrb[14].mxu1 }
 0x233   :  { %v869_v4 = vpop.f32.mrb[15].mxu1 }
 0x234   :  { %v718_v0 = vadd.f32 %v867_v2, %v1286_v37  ;;  %v870_v5 = vadd.f32 %v869_v4, %v868_v63 }
 0x236   :  { %762 = vst [vmem:[#allocation8 + $0x30] sm:$0xff] %v718_v0  ;;  %v721_v6 = vadd.f32 %v870_v5, %v1286_v37 }
 0x238   :  { %763 = vst [vmem:[#allocation8 + $0x38] sm:$0xff] %v721_v6  ;;  %v871_v46 = vpop.f32.mrb[16].mxu1 }
 0x239   :  { %v872_v7 = vpop.f32.mrb[17].mxu1 }
 0x23a   :  { %v873_v9 = vadd.f32 %v872_v7, %v871_v46  ;;  %v874_v47 = vpop.f32.mrb[18].mxu1 }
 0x23b   :  { %v875_v10 = vpop.f32.mrb[19].mxu1 }
 0x23c   :  { %v726_v11 = vadd.f32 %v873_v9, %v1286_v37  ;;  %v876_v13 = vadd.f32 %v875_v10, %v874_v47 }
 0x23e   :  { %764 = vst [vmem:[#allocation8 + $0x40] sm:$0xff] %v726_v11  ;;  %v729_v16 = vadd.f32 %v876_v13, %v1286_v37 }
 0x240   :  { %765 = vst [vmem:[#allocation8 + $0x48] sm:$0xff] %v729_v16  ;;  %v877_v17 = vpop.f32.mrb[20].mxu1 }
 0x241   :  { %v878_v18 = vpop.f32.mrb[21].mxu1 }
 0x242   :  { %v879_v21 = vadd.f32 %v878_v18, %v877_v17  ;;  %v880_v22 = vpop.f32.mrb[22].mxu1 }
 0x243   :  { %v881_v23 = vpop.f32.mrb[23].mxu1 }
 0x244   :  { %v734_v25 = vadd.f32 %v879_v21, %v1286_v37  ;;  %v882_v26 = vadd.f32 %v881_v23, %v880_v22 }
 0x246   :  { %766 = vst [vmem:[#allocation8 + $0x50] sm:$0xff] %v734_v25  ;;  %v737_v27 = vadd.f32 %v882_v26, %v1286_v37 }
 0x248   :  { %767 = vst [vmem:[#allocation8 + $0x58] sm:$0xff] %v737_v27  ;;  %v883_v28 = vpop.f32.mrb[24].mxu1 }
 0x249   :  { %v884_v29 = vpop.f32.mrb[25].mxu1 }
 0x24a   :  { %v885_v8 = vadd.f32 %v884_v29, %v883_v28  ;;  %v886_v12 = vpop.f32.mrb[26].mxu1 }
 0x24b   :  { %v887_v14 = vpop.f32.mrb[27].mxu1 }
 0x24c   :  { %v742_v32 = vadd.f32 %v885_v8, %v1286_v37  ;;  %v888_v15 = vadd.f32 %v887_v14, %v886_v12 }
 0x24e   :  { %768 = vst [vmem:[#allocation8 + $0x60] sm:$0xff] %v742_v32  ;;  %v745_v31 = vadd.f32 %v888_v15, %v1286_v37 }
 0x250   :  { %769 = vst [vmem:[#allocation8 + $0x68] sm:$0xff] %v745_v31  ;;  %v889_v19 = vpop.f32.mrb[28].mxu1 }
 0x251   :  { %v890_v20 = vpop.f32.mrb[29].mxu1 }
 0x252   :  { %v891_v24 = vadd.f32 %v890_v20, %v889_v19  ;;  %v892_v34 = vpop.f32.mrb[30].mxu1 }
 0x253   :  { %v893_v30 = vpop.f32.mrb[31].mxu1 }
 0x254   :  { %v750_v35 = vadd.f32 %v891_v24, %v1286_v37  ;;  %v894_v33 = vadd.f32 %v893_v30, %v892_v34 }
 0x256   :  { %770 = vst [vmem:[#allocation8 + $0x70] sm:$0xff] %v750_v35  ;;  %v753_v36 = vadd.f32 %v894_v33, %v1286_v37 }
 0x258   :  { %771 = vst [vmem:[#allocation8 + $0x78] sm:$0xff] %v753_v36 }
 0x259   :  { %1093 = shalt.err (!%p1090_p0)
}
 0x25a   :  { %s1094_s14 = scalar_lea.hbm %s1324_s5, 2048 }
 0x25b   :  { %p1095_p1 = scmp.ne.s32.totalorder %s1324_s5, %s1094_s14  ;;  %p1098_p2 = scmp.lt.u32.totalorder %s1094_s14, %s1324_s5 }
 0x25d   :  { %p1100_p3 = pnand %p1098_p2, %p1095_p1 }
 0x25f   :  { %1103 = shalt.err (!%p1100_p3)
}
 0x260   :  { %783 = dma.vmem_to_hbm [thread:$0]  %s778_s10, 2048, %s1324_s5, [#allocation4], %s1111_s28, %s1111_s28, %s1112_s29  }
 0x261   :  { %1108 = dma.done.wait [#allocation4], 2048  }
 0x262   :  { %1109 = vsyncadd [#allocation4], 4294965248 }
 0x263   :  { %787 = vsyncpa [#allocation3], 1 }
 0x264   :  { %788 = vsyncpa [#allocation6], 1 }
 0x265   :  { %789 = vsyncpa [#allocation4], 1 }

</bundles_post_ra>
